<compile_context>
chip_gen: v6e
topology: v6e:2x2x1
jax: 0.10.0
libtpu: 0.0.40
codegen_flags: <defaults>
</compile_context>

<pallas_src>
import jax
import jax.numpy as jnp
from jax import lax
from jax.experimental import pallas as pl
from jax.experimental.pallas import tpu as pltpu


def _round_up(v, m):
    return ((v + m - 1) // m) * m


def _pred_heads_kernel(x_ref, w1_ref, b1_ref, w2t_ref, b2t_ref, o_ref):
    # One row-tile per grid step; everything below is VMEM-resident for this tile.
    nc = o_ref.shape[0]                                   # real num_class (<= nc_pad)

    x = x_ref[...]                                        # (tile, d_model)
    h = jnp.dot(x, w1_ref[...],
                preferred_element_type=jnp.float32)       # (tile, hidden), f32 acc
    h = jnp.maximum(h + b1_ref[...], 0.0)                 # bias + ReLU in f32

    # Dropout(0.4): identity at inference time.

    # Transposed second matmul: (nc_pad, hidden) . (tile, hidden)^T -> (nc_pad, tile).
    # Keeps MXU contraction on the lane-dense hidden axis and makes the *stored*
    # output lane-dense over the tile axis with only `nc` real rows.
    h = h.astype(w2t_ref.dtype)                           # matmul operand dtype
    yt = lax.dot_general(w2t_ref[...], h,
                         dimension_numbers=(((1,), (1,)), ((), ())),
                         preferred_element_type=jnp.float32)  # (nc_pad, tile), f32
    yt = jnp.maximum(yt + b2t_ref[...], 0.0)              # bias + ReLU in f32
    o_ref[...] = yt[:nc, :].astype(o_ref.dtype)           # store only real classes


def pred_heads_forward(x, w1, b1, w2, b2, *, tile_n=1024, compute_dtype=None):
    """x: (..., d_model); w1: (d_model, 256); b1: (256,) or (1,256);
    w2: (256, num_class); b2: (num_class,) or (1,num_class).
    Returns (..., num_class). compute_dtype (e.g. jnp.bfloat16) sets the matmul
    operand dtype; accumulation/bias/ReLU stay in f32, output stored in x.dtype."""
    lead = x.shape[:-1]
    d_model = x.shape[-1]
    n = 1
    for s in lead:
        n *= s

    hidden = w1.shape[1]
    num_class = w2.shape[1]
    out_dtype = x.dtype
    mm_dtype = jnp.dtype(compute_dtype) if compute_dtype is not None else jnp.dtype(x.dtype)

    # --- Operand prep (host/XLA side, once per call) --------------------------
    x2d = x.reshape(n, d_model).astype(mm_dtype)
    w1c = w1.astype(mm_dtype)
    b1r = jnp.asarray(b1, jnp.float32).reshape(1, hidden)          # f32 bias row

    # Transposed 2nd-layer weight, sublane-padded only to a multiple of 8 (no 128
    # lane padding needed anymore: lanes carry the row-tile axis).
    nc_pad = max(8, _round_up(num_class, 8))
    w2t = jnp.zeros((nc_pad, hidden), mm_dtype).at[:num_class, :].set(
        jnp.asarray(w2).T.astype(mm_dtype))
    b2t = jnp.zeros((nc_pad, 1), jnp.float32).at[:num_class, 0].set(
        jnp.asarray(b2, jnp.float32).reshape(-1))

    # --- Row tiling -----------------------------------------------------------
    # n < 128: one exact-size block (every block dim == full array dim -> legal).
    # n >= 128: tile is a multiple of 128 (lane-dense transposed output stores),
    #           as big as tile_n allows, but capped so grid >= 2 when there is
    #           enough work to split across v7x's two TensorCores.
    if n < 128:
        tile = n
    else:
        tile = max(128, (min(tile_n, n) // 128) * 128)
        if n >= 512:
            half = max(128, _round_up(pl.cdiv(n, 2), 128))
            tile = min(tile, half)
    grid = (pl.cdiv(n, tile),)

    # --- VMEM budget (explicit limit: the f32 intermediates are not in BlockSpecs)
    in_sz = jnp.dtype(mm_dtype).itemsize
    out_sz = jnp.dtype(out_dtype).itemsize
    budget = (
        2 * tile * d_model * in_sz                          # x tile (double-buffered)
        + 2 * num_class * tile * out_sz                     # out tile (double-buffered)
        + 2 * (d_model * hidden + nc_pad * hidden) * in_sz  # resident weights
        + 2 * (hidden + nc_pad) * 4                         # biases
        + tile * hidden * 4                                 # h intermediate (f32)
        + nc_pad * tile * 4                                  # yt intermediate (f32)
    )
    vmem_limit = int(min(64 * 1024 * 1024, max(32 * 1024 * 1024, 2 * budget)))

    flops = 2 * n * hidden * (d_model + nc_pad)
    bytes_accessed = (
        n * d_model * in_sz + n * num_class * out_sz
        + (d_model * hidden + nc_pad * hidden) * in_sz + (hidden + nc_pad) * 4)

    out_t = pl.pallas_call(
        _pred_heads_kernel,
        out_shape=jax.ShapeDtypeStruct((num_class, n), out_dtype),
        grid=grid,
        in_specs=[
            pl.BlockSpec((tile, d_model), lambda i: (i, 0)),     # streamed per tile
            pl.BlockSpec((d_model, hidden), lambda i: (0, 0)),   # VMEM-resident
            pl.BlockSpec((1, hidden), lambda i: (0, 0)),
            pl.BlockSpec((nc_pad, hidden), lambda i: (0, 0)),
            pl.BlockSpec((nc_pad, 1), lambda i: (0, 0)),
        ],
        out_specs=pl.BlockSpec((num_class, tile), lambda i: (0, i)),
        compiler_params=pltpu.CompilerParams(
            dimension_semantics=("parallel",),
            vmem_limit_bytes=vmem_limit),
        cost_estimate=pl.CostEstimate(
            flops=flops, transcendentals=0, bytes_accessed=bytes_accessed),
    )(x2d, w1c, b1r, w2t, b2t)

    return out_t.T.reshape(*lead, num_class)


def _init_params(key, d_model, num_class, hidden=256, dtype=jnp.float32):
    k1, k2, k3, k4 = jax.random.split(key, 4)
    w1 = jax.random.normal(k1, (d_model, hidden), dtype) * (2.0 / (d_model + hidden)) ** 0.5
    b1 = (jax.random.uniform(k2, (hidden,), dtype) - 0.5) * 0.1
    w2 = jax.random.normal(k3, (hidden, num_class), dtype) * (2.0 / (hidden + num_class)) ** 0.5
    b2 = (jax.random.uniform(k4, (num_class,), dtype) - 0.5) * 0.1
    return w1, b1, w2, b2


def _reference(x, w1, b1, w2, b2):
    # Plain-JAX reference (eval-mode dropout == identity).
    return jnp.maximum(jnp.maximum(x @ w1 + b1, 0.0) @ w2 + b2, 0.0)


if __name__ == "__main__":
    key = jax.random.PRNGKey(0)
    kx, kp, kx2, kx3 = jax.random.split(key, 4)

    # Small shapes consistent with the module: batch=2, seq=8, d_model=32, 4 classes.
    batch, seq, d_model, num_class = 2, 8, 32, 4
    x = jax.random.normal(kx, (batch, seq, d_model), jnp.float32)
    w1, b1, w2, b2 = _init_params(kp, d_model, num_class)

    out = jax.block_until_ready(pred_heads_forward(x, w1, b1, w2, b2))
    ref = _reference(x, w1, b1, w2, b2)
    assert out.shape == (batch, seq, num_class)
    assert jnp.allclose(out, ref, atol=1e-5, rtol=1e-5)

    # Row count not a multiple of 8 (exercises the exact single-block path, n=15).
    x2 = jax.random.normal(kx2, (3, 5, d_model), jnp.float32)
    out2 = jax.block_until_ready(pred_heads_forward(x2, w1, b1, w2, b2))
    ref2 = _reference(x2, w1, b1, w2, b2)
    assert out2.shape == (3, 5, num_class)
    assert jnp.allclose(out2, ref2, atol=1e-5, rtol=1e-5)

    # Larger ragged row count (multi-step grid + clamped edge block, n=300).
    x3 = jax.random.normal(kx3, (4, 75, d_model), jnp.float32)
    out3 = jax.block_until_ready(pred_heads_forward(x3, w1, b1, w2, b2))
    ref3 = _reference(x3, w1, b1, w2, b2)
    assert out3.shape == (4, 75, num_class)
    assert jnp.allclose(out3, ref3, atol=1e-5, rtol=1e-5)

    # Opt-in bf16 matmul-operand path (f32 accumulate / bias / ReLU), loose tolerance.
    out3_bf16 = jax.block_until_ready(
        pred_heads_forward(x3, w1, b1, w2, b2, compute_dtype=jnp.bfloat16))
    assert jnp.allclose(out3_bf16, ref3, atol=0.1, rtol=0.1)

    print("KERNEL_OK")
</pallas_src>

<mosaic_0001>
module attributes {stable_mosaic.version = 11 : i64} {
  func.func @_pred_heads_kernel(%arg0: i32, %arg1: memref<16x32xf32, #tpu.memory_space<vmem>>, %arg2: memref<32x256xf32, #tpu.memory_space<vmem>>, %arg3: memref<1x256xf32, #tpu.memory_space<vmem>>, %arg4: memref<8x256xf32, #tpu.memory_space<vmem>>, %arg5: memref<8x1xf32, #tpu.memory_space<vmem>>, %arg6: memref<4x16xf32, #tpu.memory_space<vmem>>) attributes {dimension_semantics = [#tpu.dimension_semantics<parallel>], iteration_bounds = array<i64: 1>, scalar_prefetch = 0 : i64, scratch_operands = 0 : i64, tpu.core_type = #tpu.core_type<tc>, window_params = [{transform_indices = @transform_0, window_bounds = array<i64: 16, 32>}, {pipeline_mode = #tpu.pipeline_mode<synchronous>, transform_indices = @transform_1, window_bounds = array<i64: 32, 256>}, {pipeline_mode = #tpu.pipeline_mode<synchronous>, transform_indices = @transform_2, window_bounds = array<i64: 1, 256>}, {pipeline_mode = #tpu.pipeline_mode<synchronous>, transform_indices = @transform_3, window_bounds = array<i64: 8, 256>}, {pipeline_mode = #tpu.pipeline_mode<synchronous>, transform_indices = @transform_4, window_bounds = array<i64: 8, 1>}, {transform_indices = @transform_5, window_bounds = array<i64: 4, 16>}]} {
    %c0 = arith.constant 0 : index
    %c0_0 = arith.constant 0 : index
    %0 = vector.load %arg1[%c0, %c0_0] : memref<16x32xf32, #tpu.memory_space<vmem>>, vector<16x32xf32>
    %c0_1 = arith.constant 0 : index
    %c0_2 = arith.constant 0 : index
    %1 = vector.load %arg2[%c0_1, %c0_2] : memref<32x256xf32, #tpu.memory_space<vmem>>, vector<32x256xf32>
    %cst = arith.constant dense<0.000000e+00> : vector<16x256xf32>
    %2 = tpu.matmul %0, %1, %cst {dimension_numbers = #tpu.dot_dimension_numbers<[1], [0], [0], [1], [0, 0, 1, 1], [], []>} : vector<16x32xf32>, vector<32x256xf32>, vector<16x256xf32> -> vector<16x256xf32>
    %c0_3 = arith.constant 0 : index
    %c0_4 = arith.constant 0 : index
    %3 = vector.load %arg3[%c0_3, %c0_4] : memref<1x256xf32, #tpu.memory_space<vmem>>, vector<1x256xf32>
    %4 = vector.broadcast %3 : vector<1x256xf32> to vector<16x256xf32>
    %5 = arith.addf %2, %4 : vector<16x256xf32>
    %cst_5 = arith.constant 0.000000e+00 : f32
    %6 = vector.broadcast %cst_5 : f32 to vector<16x256xf32>
    %7 = arith.maximumf %5, %6 : vector<16x256xf32>
    %c0_6 = arith.constant 0 : index
    %c0_7 = arith.constant 0 : index
    %8 = vector.load %arg4[%c0_6, %c0_7] : memref<8x256xf32, #tpu.memory_space<vmem>>, vector<8x256xf32>
    %cst_8 = arith.constant dense<0.000000e+00> : vector<8x16xf32>
    %9 = tpu.matmul %8, %7, %cst_8 {dimension_numbers = #tpu.dot_dimension_numbers<[1], [1], [0], [0], [0, 0, 1, 0], [], []>} : vector<8x256xf32>, vector<16x256xf32>, vector<8x16xf32> -> vector<8x16xf32>
    %c0_9 = arith.constant 0 : index
    %c0_10 = arith.constant 0 : index
    %10 = vector.load %arg5[%c0_9, %c0_10] : memref<8x1xf32, #tpu.memory_space<vmem>>, vector<8x1xf32>
    %11 = vector.broadcast %10 : vector<8x1xf32> to vector<8x16xf32>
    %12 = arith.addf %9, %11 : vector<8x16xf32>
    %cst_11 = arith.constant 0.000000e+00 : f32
    %13 = vector.broadcast %cst_11 : f32 to vector<8x16xf32>
    %14 = arith.maximumf %12, %13 : vector<8x16xf32>
    %15 = vector.extract_strided_slice %14 {offsets = [0, 0], sizes = [4, 16], strides = [1, 1]} : vector<8x16xf32> to vector<4x16xf32>
    %c0_12 = arith.constant 0 : index
    %c0_13 = arith.constant 0 : index
    %16 = vector.load %arg6[%c0_12, %c0_13] : memref<4x16xf32, #tpu.memory_space<vmem>>, vector<4x16xf32>
    tpu.vector_store %arg6[%c0_12, %c0_13], %15 {strides = array<i32>} : memref<4x16xf32, #tpu.memory_space<vmem>>, vector<4x16xf32>,
    return
  }
  func.func @transform_0(%arg0: i32) -> (i32, i32) {
    %c0_i32 = arith.constant 0 : i32
    %c0_i32_0 = arith.constant 0 : i32
    return %arg0, %c0_i32 : i32, i32
  }
  func.func @transform_1(%arg0: i32) -> (i32, i32) {
    %c0_i32 = arith.constant 0 : i32
    %c0_i32_0 = arith.constant 0 : i32
    %c0_i32_1 = arith.constant 0 : i32
    return %c0_i32, %c0_i32_0 : i32, i32
  }
  func.func @transform_2(%arg0: i32) -> (i32, i32) {
    %c0_i32 = arith.constant 0 : i32
    %c0_i32_0 = arith.constant 0 : i32
    %c0_i32_1 = arith.constant 0 : i32
    return %c0_i32, %c0_i32_0 : i32, i32
  }
  func.func @transform_3(%arg0: i32) -> (i32, i32) {
    %c0_i32 = arith.constant 0 : i32
    %c0_i32_0 = arith.constant 0 : i32
    %c0_i32_1 = arith.constant 0 : i32
    return %c0_i32, %c0_i32_0 : i32, i32
  }
  func.func @transform_4(%arg0: i32) -> (i32, i32) {
    %c0_i32 = arith.constant 0 : i32
    %c0_i32_0 = arith.constant 0 : i32
    %c0_i32_1 = arith.constant 0 : i32
    return %c0_i32, %c0_i32_0 : i32, i32
  }
  func.func @transform_5(%arg0: i32) -> (i32, i32) {
    %c0_i32 = arith.constant 0 : i32
    %c0_i32_0 = arith.constant 0 : i32
    return %c0_i32, %arg0 : i32, i32
  }
}

</mosaic_0001>

<bundles_post_ra>
// kernel: tpu_custom_call.1
= control target key start
LH: loop header
LB: loop body
LE: loop exit
PB: predicated region body
PF: predicated region fallthrough
CT: control target
= control target key end

     0   :  { %10 = vsyncpa [#allocation3], 0  ;;  %s424_s0 = inlined_call_operand.hbm [shape: f32[16,32], index: 0, kind: input, shape index: {}]   ;;  %s425_s1 = inlined_call_operand.hbm [shape: f32[32,256], index: 1, kind: input, shape index: {}]   ;;  %s426_s2 = inlined_call_operand.vmem [shape: f32[1,256], index: 2, kind: input, shape index: {}]   ;;  %s427_s3 = inlined_call_operand.hbm [shape: f32[8,256], index: 3, kind: input, shape index: {}]   ;;  %s428_s4 = inlined_call_operand.vmem [shape: f32[8,1], index: 4, kind: input, shape index: {}]   ;;  %s429_s5 = inlined_call_operand.hbm [shape: f32[4,16], index: 5, kind: output, shape index: {}]  }
   0x1   :  { %11 = vsyncpa [#allocation6], 0 }
   0x2   :  { %12 = vsyncpa [#allocation4], 0  ;;  %s366_s18 = smov [#allocation5]  }
   0x3   :  { %s30_s19 = sshll.u32 %s366_s18, 4  ;;  %s31_s19 = int_to_ptr.vmem [resolvable:$true] %s30_s19 }
   0x4   :  { %s288_s20 = scalar_lea.vmem %s31_s19, 1024  ;;  %p293_p1 = scmp.lt.s32.totalorder %s31_s19, %s31_s19 }
   0x5   :  { %p289_p0 = scmp.ne.s32.totalorder %s31_s19, %s288_s20  ;;  %p294_p2 = scmp.lt.s32.totalorder %s288_s20, %s288_s20 }
   0x7   :  { %p295_p3 = por %p294_p2, %p293_p1 }
   0x9   :  { %p296_p4 = pnand %p295_p3, %p289_p0 }
   0xb   :  { %299 = shalt.err (!%p296_p4)
}
   0xc   :  { %s367_s21 = smov 256   ;;  %s368_s22 = smov 16  }
   0xd   :  { %36 = dma.hbm_to_vmem [thread:$0]  %s425_s1, 1024, %s31_s19, [#allocation6], %s367_s21, %s367_s21, %s368_s22  }
   0xe   :  { %s369_s25 = smov [#allocation2]  }
   0xf   :  { %s18_s26 = sshll.u32 %s369_s25, 4  ;;  %s19_s26 = int_to_ptr.vmem [resolvable:$true] %s18_s26 }
  0x10   :  { %s308_s27 = scalar_lea.vmem %s19_s26, 256  ;;  %p313_p6 = scmp.lt.s32.totalorder %s19_s26, %s19_s26 }
  0x11   :  { %p309_p5 = scmp.ne.s32.totalorder %s19_s26, %s308_s27  ;;  %p314_p7 = scmp.lt.s32.totalorder %s308_s27, %s308_s27 }
  0x13   :  { %p315_p8 = por %p314_p7, %p313_p6 }
  0x15   :  { %p316_p9 = pnand %p315_p8, %p309_p5 }
  0x17   :  { %319 = shalt.err (!%p316_p9)
}
  0x18   :  { %s370_s28 = smov 128   ;;  %s371_s29 = smov 8  }
  0x19   :  { %24 = dma.hbm_to_vmem [thread:$0]  %s424_s0, 256, %s19_s26, [#allocation3], %s370_s28, %s370_s28, %s371_s29  }
  0x1a   :  { %s372_s7 = smov [#allocation7]  }
  0x1b   :  { %s45_s8 = sshll.u32 %s372_s7, 4  ;;  %s46_s8 = int_to_ptr.vmem [resolvable:$true] %s45_s8 }
  0x1c   :  { %s328_s1 = scalar_lea.vmem %s46_s8, 256  ;;  %p333_p11 = scmp.lt.s32.totalorder %s46_s8, %s46_s8 }
  0x1d   :  { %p329_p10 = scmp.ne.s32.totalorder %s46_s8, %s328_s1  ;;  %p334_p12 = scmp.lt.s32.totalorder %s328_s1, %s328_s1 }
  0x1f   :  { %p335_p13 = por %p334_p12, %p333_p11 }
  0x21   :  { %p336_p0 = pnand %p335_p13, %p329_p10 }
  0x23   :  { %339 = shalt.err (!%p336_p0)
}
  0x24   :  { %48 = dma.hbm_to_vmem [thread:$0]  %s427_s3, 256, %s46_s8, [#allocation6]  }
  0x25   :  { %360 = dma.done.wait [#allocation3], 256  }
  0x26   :  { %361 = vsyncadd [#allocation3], 4294967040 }
  0x27   :  { %362 = dma.done.wait [#allocation6], 1280  }
  0x28   :  { %363 = vsyncadd [#allocation6], 4294966016  ;;  %v373_v0 = vmov 0.0   ;;  %v69_v1 = vld [vmem:[#allocation5 + $0x38] sm:$0xff]  ;;  %v68_v2 = vld [vmem:[#allocation5 + $0x30] sm:$0xff]  ;;  %vm82_vm0 = vcmask 261120   ;;  %v72_v14 = vlaneseq }
  0x29   :  { %153 = vmatprep.mubr.f32.mxu0 %v373_v0  ;;  %v67_v3 = vld [vmem:[#allocation5 + $0x28] sm:$0xff]  ;;  %113 = vmatprep.subr.mxu0 %v69_v1  ;;  %v66_v4 = vld [vmem:[#allocation5 + $0x20] sm:$0xff]  ;;  %v65_v5 = vld [vmem:[#allocation5 + $0x18] sm:$0xff]  ;;  %v374_v13 = vmov 0   ;;  %vm249_vm1 = vcmask 125952  }
  0x2a   :  { %114 = vmatpush1.msra.mxu0 %v68_v2  ;;  %v64_v6 = vld [vmem:[#allocation5 + $0x10] sm:$0xff]  ;;  %v63_v7 = vld [vmem:[#allocation5 + $0x8] sm:$0xff]  ;;  %v62_v8 = vld [vmem:[#allocation5] sm:$0xff]  ;;  %279 = vset.pattern.permute.xlu0 %v374_v13  ;;  %v73_v15 = vshrl.u32 %v72_v14, 7 }
  0x2b   :  { %115 = vmatprep.subr.mxu0 %v67_v3  ;;  %v60_v9 = vld [vmem:[#allocation2] sm:$0xff]  ;;  %v61_v10 = vld [vmem:[#allocation2 + $0x8] sm:$0xff]  ;;  %v171_v11 = vld [vmem:[#allocation7 + $0x8] sm:$0xff] }
  0x2c   :  { %116 = vmatpush1.msra.mxu0 %v66_v4  ;;  %242 = vmatprep.mubr.f32.mxu1 %v171_v11  ;;  %v172_v12 = vld [vmem:[%s428_s4] sm:$0xff]  ;;  %v78_v16 = vsub.s32 1, %v73_v15  ;;  %v74_v17 = vsub.s32 0, %v73_v15  ;;  %v170_v33 = vld [vmem:[#allocation7] sm:$0xff] }
  0x2d   :  { %117 = vmatprep.subr.mxu0 %v65_v5  ;;  %175 = vperm.xlu0 %279, %v172_v12   ;;  %v70_v19 = vld [vmem:[%s426_s2] sm:$0x3]  ;;  %s375_s2 = smov [#allocation8]  }
  0x2e   :  { %118 = vmatpush1.msra.mxu0 %v64_v6  ;;  %v79_v21 = vrot.slane %v70_v19, %v78_v16  ;;  %v75_v22 = vrot.slane %v70_v19, %v74_v17  ;;  %s257_s4 = sshll.u32 %s375_s2, 4  ;;  %s258_s4 = int_to_ptr.vmem [resolvable:$true] %s257_s4 }
  0x2f   :  { %119 = vmatprep.subr.mxu0 %v63_v7  ;;  %s340_s13 = scalar_lea.vmem %s258_s4, 64  ;;  %p345_p2 = scmp.lt.s32.totalorder %s258_s4, %s258_s4 }
  0x30   :  { %120 = vmatpush1.msra.mxu0 %v62_v8  ;;  %p341_p1 = scmp.ne.s32.totalorder %s258_s4, %s340_s13  ;;  %p346_p3 = scmp.lt.s32.totalorder %s340_s13, %s340_s13 }
  0x31   :  { %267 = vmatmul.mubr.msk.f32.vlgmr.msra.gmra.mxu0 %vm82_vm0, %v60_v9 }
  0x32   :  { %159 = vmatprep.mubr.f32.mxu0 %v373_v0  ;;  %p347_p4 = por %p346_p3, %p345_p2 }
  0x34   :  { %p348_p5 = pnand %p347_p4, %p341_p1 }
  0x35   :  { %268 = vmatmul.mubr.msk.f32.gmra.mxu0 %vm82_vm0, %v61_v10 }
  0xa8   :  { %v176_v34 = vpop.permute.xlu0 %175 }
  0xf1   :  { %v155_v18 = vpop.f32.mrf.mxu0 }
  0xf2   :  { %v156_v29 = vadd.f32 %v155_v18, %v75_v22 }
  0xf3   :  { %v157_v20 = vpop.f32.mrf.mxu0 }
  0xf4   :  { %v158_v26 = vadd.f32 %v157_v20, %v79_v21  ;;  %v166_v32 = vmax.f32 %v156_v29, 0.0 }
  0xf5   :  { %v161_v23 = vpop.f32.mrf.mxu0 }
  0xf6   :  { %v162_v24 = vadd.f32 %v161_v23, %v75_v22  ;;  %v167_v31 = vmax.f32 %v158_v26, 0.0 }
  0xf7   :  { %v163_v25 = vpop.f32.mrf.mxu0 }
  0xf8   :  { %v164_v27 = vadd.f32 %v163_v25, %v79_v21  ;;  %v168_v30 = vmax.f32 %v162_v24, 0.0 }
  0xfa   :  { %v169_v28 = vmax.f32 %v164_v27, 0.0 }
  0xfc   :  { %206 = vmatprep.subr.mxu1 %v169_v28 }
  0xfd   :  { %207 = vmatpush1.xpose.msra.mxu1 %v168_v30 }
  0xfe   :  { %208 = vmatprep.subr.mxu1 %v167_v31 }
 0x101   :  { %209 = vmatpush1.xpose.msra.mxu1 %v166_v32 }
 0x104   :  { %243 = vmatmul.mubr.f32.vlgmr.msra.gmra.mxu1 %v170_v33 }
 0x1c4   :  { %v244_v35 = vpop.f32.mrf.mxu1 }
 0x1c5   :  { %v245_v36 = vadd.f32 %v244_v35, %v176_v34 }
 0x1c6   :  { %v246_v37 = vpop.f32.mrf.mxu1 }
 0x1c7   :  { %v248_v38 = vmax.f32 %v245_v36, 0.0 }
 0x1c9   :  { %250 = vst.msk [vmem:[#allocation8] sm:$0xf] %vm249_vm1, %v248_v38 }
 0x1ca   :  { %351 = shalt.err (!%p348_p5)
}
 0x1cb   :  { %260 = dma.vmem_to_hbm [thread:$0]  %s258_s4, 64, %s429_s5, [#allocation4]  }
 0x1cc   :  { %364 = dma.done.wait [#allocation4], 64  }
 0x1cd   :  { %365 = vsyncadd [#allocation4], 4294967232 }
 0x1ce   :  { %264 = vsyncpa [#allocation3], 1 }
 0x1cf   :  { %265 = vsyncpa [#allocation6], 1 }
 0x1d0   :  { %266 = vsyncpa [#allocation4], 1 }

</bundles_post_ra>
